<compile_context>
chip_gen: v7x
topology: tpu7x:2x2x1
jax: 0.10.0
libtpu: 0.0.40
codegen_flags: <defaults>
</compile_context>

<pallas_src>
from functools import partial

import jax
import jax.numpy as jnp
from jax.experimental import pallas as pl
from jax.experimental.pallas import tpu as pltpu


_TM_CAP = 256                      # batch rows per tile
_TN_CAP = 512                      # lane-dense output width (multiple of 128)
_TK_CAP = 1024                     # reduction chunk when K is tiled
_VMEM_BUDGET = 12 * 1024 * 1024    # under v5e's 16 MiB scoped default (smallest gen)


def _round_up(v, m):
    return ((v + m - 1) // m) * m


def _pick_tile(dim, cap, quantum):
    """Largest multiple of `quantum` that divides `dim` and is <= cap.

    `dim` must already be a multiple of `quantum`.
    """
    t = max(quantum, (min(cap, dim) // quantum) * quantum)
    while t > quantum and dim % t != 0:
        t -= quantum
    return t


def _tile_vmem_bytes(tm, tk, tn, in_itemsize):
    # double-buffered x & w input tiles + double-buffered f32 output tile + bias
    return 2 * in_itemsize * (tm * tk + tk * tn) + 2 * 4 * tm * tn + 4 * tn


# ---------------------------------------------------------------------------
# Kernels
# ---------------------------------------------------------------------------
def _linear_single_tile_kernel(x_ref, w_ref, b_ref, o_ref):
    """Whole problem fits in one VMEM tile: o = x @ W + b, no accumulator state."""
    o_ref[...] = (
        jnp.dot(x_ref[...], w_ref[...], preferred_element_type=jnp.float32)
        + b_ref[...]
    ).astype(o_ref.dtype)


def _linear_tiled_kernel(x_ref, w_ref, b_ref, o_ref):
    """One (tm, tn) output tile; reduction over grid axis 2, accumulating
    directly into the resident f32 output block (k-invariant out index_map)."""
    k = pl.program_id(2)

    @pl.when(k == 0)
    def _():
        o_ref[...] = jnp.zeros_like(o_ref)

    o_ref[...] += jnp.dot(
        x_ref[...], w_ref[...], preferred_element_type=jnp.float32
    )

    @pl.when(k == pl.num_programs(2) - 1)
    def _():
        o_ref[...] += b_ref[...]          # bias epilogue in f32


# ---------------------------------------------------------------------------
# One-time parameter preparation (do this at init, NOT per forward)
# ---------------------------------------------------------------------------
def prepare_classifier_params(weight, bias, *, compute_dtype=jnp.float32):
    """Transpose nn.Linear weight (C, D) -> (D, Cp) and lane-pad classes to a
    multiple of 128; bias -> (1, Cp) f32. compute_dtype=bfloat16 enables the
    fast MXU path on v6e/v7x (f32 accumulation is kept inside the kernel)."""
    C, D = weight.shape
    Cp = _round_up(C, 128)
    w_p = (
        jnp.zeros((D, Cp), compute_dtype)
        .at[:, :C]
        .set(weight.T.astype(compute_dtype))
    )
    b_p = jnp.zeros((1, Cp), jnp.float32).at[0, :C].set(bias.astype(jnp.float32))
    return w_p, b_p


# ---------------------------------------------------------------------------
# Forward
# ---------------------------------------------------------------------------
@partial(jax.jit, static_argnames=("num_classes",))
def text_classifier_forward(x, w_p, b_p, num_classes):
    """Forward of TextClassifier: logits = x @ weight.T + bias.

    x:   (B, D)
    w_p: (D, Cp)  pre-transposed / pre-padded weight from prepare_classifier_params
    b_p: (1, Cp)  pre-padded f32 bias
    returns (B, num_classes) f32 logits (softmax is NOT applied, per forward()).
    """
    B, D = x.shape
    Dw, Cp = w_p.shape
    assert Dw == D, "w_p must come from prepare_classifier_params for this input_dim"

    if x.dtype != w_p.dtype:
        x = x.astype(w_p.dtype)            # bf16 path: cast activations once
    in_itemsize = jnp.dtype(w_p.dtype).itemsize

    # ---- M (batch): avoid over-padding; common case needs no x copy at all.
    if B <= _TM_CAP:
        Bp, tm = B, B                      # block dim == full array dim is allowed
    else:
        Bp = _round_up(B, 8)
        tm = _pick_tile(Bp, _TM_CAP, 8)

    # ---- K (input_dim): tile only when large and lane-aligned; otherwise one
    # full-K block so x never gets padded along D.
    if D > _TK_CAP and D % 128 == 0:
        tk = _pick_tile(D, _TK_CAP, 128)
    else:
        tk = D
    gk = D // tk

    # ---- N (classes): lane-dense multiple of 128; >=2 output tiles when Cp
    # allows (v7x megacore), shrunk to fit the smallest-generation VMEM budget.
    cap_n = min(_TN_CAP, Cp)
    if Cp >= 256:
        cap_n = min(cap_n, max(128, Cp // 2))
    tn = _pick_tile(Cp, cap_n, 128)
    while tn > 128 and _tile_vmem_bytes(tm, tk, tn, in_itemsize) > _VMEM_BUDGET:
        tn = _pick_tile(Cp, tn - 128, 128)

    # Pad batch rows only when actually required (large, non-8-aligned B).
    x_p = x
    if Bp != B:
        x_p = jnp.zeros((Bp, D), x.dtype).at[:B].set(x)

    grid = (Bp // tm, Cp // tn, gk)

    if grid == (1, 1, 1):
        # Single-tile fast path: everything in VMEM, no grid machinery.
        out_p = pl.pallas_call(
            _linear_single_tile_kernel,
            out_shape=jax.ShapeDtypeStruct((Bp, Cp), jnp.float32),
        )(x_p, w_p, b_p)
    else:
        out_p = pl.pallas_call(
            _linear_tiled_kernel,
            out_shape=jax.ShapeDtypeStruct((Bp, Cp), jnp.float32),
            grid=grid,
            in_specs=[
                pl.BlockSpec((tm, tk), lambda i, j, k: (i, k)),   # x tile
                pl.BlockSpec((tk, tn), lambda i, j, k: (k, j)),   # weight tile
                pl.BlockSpec((1, tn), lambda i, j, k: (0, j)),    # bias tile
            ],
            out_specs=pl.BlockSpec((tm, tn), lambda i, j, k: (i, j)),
            compiler_params=pltpu.CompilerParams(
                dimension_semantics=("parallel", "parallel", "arbitrary")
            ),
        )(x_p, w_p, b_p)

    # Padded classes carry logit == 0; slice BEFORE any downstream softmax.
    if Bp != B or Cp != num_classes:
        out_p = out_p[:B, :num_classes]
    return out_p


if __name__ == "__main__":
    # Small shapes consistent with the module: batch=8, input_dim=32, num_classes=8
    batch, input_dim, num_classes = 8, 32, 8

    key = jax.random.PRNGKey(0)
    kx, kw, kb = jax.random.split(key, 3)

    x = jax.random.normal(kx, (batch, input_dim), dtype=jnp.float32)
    # Deterministic params mirroring nn.Linear(input_dim, num_classes):
    bound = 1.0 / (input_dim ** 0.5)
    weight = jax.random.uniform(
        kw, (num_classes, input_dim), minval=-bound, maxval=bound, dtype=jnp.float32
    )
    bias = jax.random.uniform(
        kb, (num_classes,), minval=-bound, maxval=bound, dtype=jnp.float32
    )

    ref = x @ weight.T + bias

    # f32 path (exact) — params prepared once, outside the forward.
    w_p, b_p = prepare_classifier_params(weight, bias, compute_dtype=jnp.float32)
    out = jax.block_until_ready(text_classifier_forward(x, w_p, b_p, num_classes))
    assert out.shape == (batch, num_classes)
    assert jnp.allclose(out, ref, atol=1e-5, rtol=1e-5)

    # bf16 MXU path (v6e/v7x fast path); relaxed tolerance for bf16 operands.
    w_bf, b_bf = prepare_classifier_params(weight, bias, compute_dtype=jnp.bfloat16)
    out_bf = jax.block_until_ready(text_classifier_forward(x, w_bf, b_bf, num_classes))
    assert out_bf.shape == (batch, num_classes)
    assert jnp.allclose(out_bf, ref, atol=3e-2, rtol=3e-2)

    print("KERNEL_OK")
</pallas_src>

<mosaic_0001>
module attributes {stable_mosaic.version = 11 : i64} {
  func.func @_linear_single_tile_kernel(%arg0: memref<8x32xf32, #tpu.memory_space<vmem>>, %arg1: memref<32x128xf32, #tpu.memory_space<vmem>>, %arg2: memref<1x128xf32, #tpu.memory_space<vmem>>, %arg3: memref<8x128xf32, #tpu.memory_space<vmem>>) attributes {dimension_semantics = [], scalar_prefetch = 0 : i64, scratch_operands = 0 : i64, tpu.core_type = #tpu.core_type<tc>} {
    %c0 = arith.constant 0 : index
    %c0_0 = arith.constant 0 : index
    %0 = vector.load %arg0[%c0, %c0_0] : memref<8x32xf32, #tpu.memory_space<vmem>>, vector<8x32xf32>
    %c0_1 = arith.constant 0 : index
    %c0_2 = arith.constant 0 : index
    %1 = vector.load %arg1[%c0_1, %c0_2] : memref<32x128xf32, #tpu.memory_space<vmem>>, vector<32x128xf32>
    %cst = arith.constant dense<0.000000e+00> : vector<8x128xf32>
    %2 = tpu.matmul %0, %1, %cst {dimension_numbers = #tpu.dot_dimension_numbers<[1], [0], [0], [1], [0, 0, 1, 1], [], []>} : vector<8x32xf32>, vector<32x128xf32>, vector<8x128xf32> -> vector<8x128xf32>
    %c0_3 = arith.constant 0 : index
    %c0_4 = arith.constant 0 : index
    %3 = vector.load %arg2[%c0_3, %c0_4] : memref<1x128xf32, #tpu.memory_space<vmem>>, vector<1x128xf32>
    %4 = vector.broadcast %3 : vector<1x128xf32> to vector<8x128xf32>
    %5 = arith.addf %2, %4 : vector<8x128xf32>
    %c0_5 = arith.constant 0 : index
    %c0_6 = arith.constant 0 : index
    %6 = vector.load %arg3[%c0_5, %c0_6] : memref<8x128xf32, #tpu.memory_space<vmem>>, vector<8x128xf32>
    tpu.vector_store %arg3[%c0_5, %c0_6], %5 {strides = array<i32>} : memref<8x128xf32, #tpu.memory_space<vmem>>, vector<8x128xf32>,
    return
  }
}

</mosaic_0001>

<bundles_post_ra>
// kernel: text_classifier_forward.1
= control target key start
LH: loop header
LB: loop body
LE: loop exit
PB: predicated region body
PF: predicated region fallthrough
CT: control target
= control target key end

     0   :  { %8 = vsyncpa [#allocation3], 0  ;;  %s322_s0 = inlined_call_operand.hbm [shape: f32[8,32], index: 0, kind: input, shape index: {}]   ;;  %s323_s1 = inlined_call_operand.hbm [shape: f32[32,128], index: 1, kind: input, shape index: {}]   ;;  %s324_s2 = inlined_call_operand.vmem [shape: f32[1,128], index: 2, kind: input, shape index: {}]   ;;  %s325_s3 = inlined_call_operand.hbm [shape: f32[8,128], index: 3, kind: output, shape index: {}]  }
   0x1   :  { %9 = vsyncpa [#allocation6], 0 }
   0x2   :  { %10 = vsyncpa [#allocation4], 0  ;;  %s248_s12 = smov [#allocation2]   ;;  %s249_s14 = smov [#allocation5]  }
   0x3   :  { %s17_s13 = sshll.u32 %s248_s12, 4  ;;  %s26_s15 = sshll.u32 %s249_s14, 4  ;;  %s18_s13 = int_to_ptr.vmem [resolvable:$true] %s17_s13  ;;  %s276_s15 = int_to_ptr.vmem [resolvable:$true] %s26_s15 }
   0x4   :  { %s176_s18 = scalar_lea.hbm %s322_s0, 128 }
   0x5   :  { %p177_p0 = scmp.ne.s32.totalorder %s322_s0, %s176_s18  ;;  %p180_p1 = scmp.lt.u32.totalorder %s176_s18, %s322_s0 }
   0x7   :  { %p182_p2 = pnand %p180_p1, %p177_p0 }
   0x9   :  { %185 = shalt.err (!%p182_p2)
}
   0xa   :  { %s186_s23 = scalar_lea.vmem %s18_s13, 128  ;;  %p191_p4 = scmp.lt.s32.totalorder %s18_s13, %s18_s13 }
   0xb   :  { %p187_p3 = scmp.ne.s32.totalorder %s18_s13, %s186_s23  ;;  %p192_p5 = scmp.lt.s32.totalorder %s186_s23, %s186_s23 }
   0xd   :  { %p193_p6 = por %p192_p5, %p191_p4 }
   0xf   :  { %p194_p7 = pnand %p193_p6, %p187_p3 }
  0x11   :  { %197 = shalt.err (!%p194_p7)
}
  0x12   :  { %20 = dma.hbm_to_vmem [thread:$0]  %s322_s0, 128, %s18_s13, [#allocation3]  }
  0x13   :  { %s198_s28 = scalar_lea.hbm %s323_s1, 512 }
  0x14   :  { %p199_p8 = scmp.ne.s32.totalorder %s323_s1, %s198_s28  ;;  %p202_p9 = scmp.lt.u32.totalorder %s198_s28, %s323_s1 }
  0x16   :  { %p204_p10 = pnand %p202_p9, %p199_p8 }
  0x18   :  { %207 = shalt.err (!%p204_p10)
}
  0x19   :  { %s208_s6 = scalar_lea.vmem %s276_s15, 512  ;;  %p213_p12 = scmp.lt.s32.totalorder %s276_s15, %s276_s15 }
  0x1a   :  { %p209_p11 = scmp.ne.s32.totalorder %s276_s15, %s208_s6  ;;  %p214_p13 = scmp.lt.s32.totalorder %s208_s6, %s208_s6 }
  0x1c   :  { %p215_p0 = por %p214_p13, %p213_p12 }
  0x1e   :  { %p216_p1 = pnand %p215_p0, %p209_p11 }
  0x20   :  { %219 = shalt.err (!%p216_p1)
}
  0x21   :  { %s250_s0 = smov 128   ;;  %s251_s7 = smov 8  }
  0x22   :  { %32 = dma.hbm_to_vmem [thread:$0]  %s323_s1, 512, %s276_s15, [#allocation6], %s250_s0, %s250_s0, %s251_s7  }
  0x23   :  { %242 = dma.done.wait [#allocation3], 128  }
  0x24   :  { %243 = vsyncadd [#allocation3], 4294967168 }
  0x25   :  { %244 = dma.done.wait [#allocation6], 512  }
  0x26   :  { %245 = vsyncadd [#allocation6], 4294966784  ;;  %v252_v0 = vmov 0.0|0.0   ;;  %vm253_vm0 = vmmov 0   ;;  %v254_v1 = vmov 0.0   ;;  %v42_v2 = vld [vmem:[#allocation5] sm:$0xff] }
  0x27   :  { %162 = vmatprep.subr.bf16.mxu0 %v252_v0  ;;  %159 = vmatprep.mubr.msk.f32.mxu0 %vm253_vm0, %v254_v1  ;;  %v43_v3 = vld [vmem:[#allocation5 + $0x8] sm:$0xff]  ;;  %v44_v4 = vld [vmem:[#allocation5 + $0x10] sm:$0xff]  ;;  %v45_v6 = vld [vmem:[#allocation5 + $0x18] sm:$0xff]  ;;  %vm53_vm1 = vcmask 261120   ;;  %s255_s11 = smov [#allocation7]  }
  0x28   :  { %v163_v5 = vpack.c.bf16 %v43_v3, %v42_v2  ;;  %v166_v7 = vpack.c.bf16 %v45_v6, %v44_v4  ;;  %v41_v8 = vld [vmem:[#allocation2] sm:$0xff]  ;;  %s134_s12 = sshll.u32 %s255_s11, 4  ;;  %s135_s12 = int_to_ptr.vmem [resolvable:$true] %s134_s12 }
  0x29   :  { %v144_v9 = vld [vmem:[%s324_s2] ss:$0 sm:$0xff]  ;;  %s220_s13 = scalar_lea.vmem %s135_s12, 128  ;;  %p225_p3 = scmp.lt.s32.totalorder %s135_s12, %s135_s12 }
  0x2a   :  { %164 = vmatpush3.bf16.msra.mxu0 %v163_v5  ;;  %p221_p2 = scmp.ne.s32.totalorder %s135_s12, %s220_s13  ;;  %p226_p4 = scmp.lt.s32.totalorder %s220_s13, %s220_s13 }
  0x2b   :  { %165 = vmatprep.subr.bf16.mxu0 %v252_v0 }
  0x2c   :  { %p227_p5 = por %p226_p4, %p225_p3 }
  0x2e   :  { %167 = vmatpush3.bf16.msra.mxu0 %v166_v7  ;;  %p228_p6 = pnand %p227_p5, %p221_p2 }
  0x31   :  { %160 = vmatmul.mubr.msk.f32.vlgmr.msra.gmra.mrb[0].mxu0 %vm53_vm1, %v41_v8 }
 0x104   :  { %v123_v10 = vpop.f32.mrb[0].mxu0 }
 0x105   :  { %v124_v11 = vadd.f32 %v144_v9, %v123_v10  ;;  %v161_v12 = vpop.f32.mrb[1].mxu0 }
 0x107   :  { %127 = vst [vmem:[#allocation7] sm:$0xff] %v124_v11 }
 0x108   :  { %231 = shalt.err (!%p228_p6)
}
 0x109   :  { %s232_s16 = scalar_lea.hbm %s325_s3, 128 }
 0x10a   :  { %p233_p7 = scmp.ne.s32.totalorder %s325_s3, %s232_s16  ;;  %p236_p8 = scmp.lt.u32.totalorder %s232_s16, %s325_s3 }
 0x10c   :  { %p238_p9 = pnand %p236_p8, %p233_p7 }
 0x10e   :  { %241 = shalt.err (!%p238_p9)
}
 0x10f   :  { %137 = dma.vmem_to_hbm [thread:$0]  %s135_s12, 128, %s325_s3, [#allocation4]  }
 0x110   :  { %246 = dma.done.wait [#allocation4], 128  }
 0x111   :  { %247 = vsyncadd [#allocation4], 4294967168 }
 0x112   :  { %141 = vsyncpa [#allocation3], 1 }
 0x113   :  { %142 = vsyncpa [#allocation6], 1 }
 0x114   :  { %143 = vsyncpa [#allocation4], 1 }

</bundles_post_ra>
